<compile_context>
chip_gen: v5e
topology: v5e:2x2
jax: 0.10.0
libtpu: 0.0.40
codegen_flags: <defaults>
</compile_context>

<pallas_src>
import math

import jax
import jax.numpy as jnp
from jax.experimental import pallas as pl
from jax.experimental.pallas import tpu as pltpu


_LN_2PI = math.log(2.0 * math.pi)

# Conservative per-batch-row VMEM cost for these shapes: f32 obs/act/mu tiles
# (double-buffered) + f32/bf16 activation intermediates + logp lane.
_PER_ROW_VMEM_BYTES = 2048


def _round_up(x, m):
    return ((x + m - 1) // m) * m


def _max_tile_b():
    """Upper bound on rows per grid step, derived from VMEM capacity."""
    try:
        vmem_bytes = pltpu.get_tpu_info().vmem_capacity_bytes
    except Exception:
        vmem_bytes = 64 << 20  # v7x per-TC capacity (smallest of v5e/v6e/v7x)
    # Use at most ~1/4 of physical VMEM; clamp to [512, 8192] rows.
    cap = (vmem_bytes // 4) // _PER_ROW_VMEM_BYTES
    return max(512, min(8192, (cap // 8) * 8))


def _choose_tile_b(B):
    """Rows per grid step: 8-row f32 sublane granule; >=2 tiles for larger
    batches so v7x's two TensorCores both get work; capped by VMEM budget."""
    b8 = _round_up(max(B, 1), 8)
    if b8 <= 256:
        return b8  # single tiny tile (action-sampling path)
    return min(_max_tile_b(), _round_up(pl.cdiv(b8, 2), 8))


# ---------------------------------------------------------------------------
# Kernels
# ---------------------------------------------------------------------------
def _mlp_mu(x, w1, b1, w2, b2, w3, b3):
    """3-layer MLP: tanh, tanh, identity.

    Weights arrive as bf16; activations are cast to bf16 right before each
    MXU contraction (single-pass vmatmul), accumulation and all VPU/EUP work
    (bias add, tanh) stay in f32.
    """
    h = jnp.tanh(jnp.dot(x.astype(jnp.bfloat16), w1,
                         preferred_element_type=jnp.float32) + b1)
    h = jnp.tanh(jnp.dot(h.astype(jnp.bfloat16), w2,
                         preferred_element_type=jnp.float32) + b2)
    return jnp.dot(h.astype(jnp.bfloat16), w3,
                   preferred_element_type=jnp.float32) + b3


def _mu_kernel(x_ref, w1_ref, b1_ref, w2_ref, b2_ref, w3_ref, b3_ref, mu_ref):
    mu = _mlp_mu(x_ref[...], w1_ref[...], b1_ref[...],
                 w2_ref[...], b2_ref[...], w3_ref[...], b3_ref[...])
    mu_ref[...] = mu.astype(mu_ref.dtype)


def _fused_kernel(x_ref, a_ref, inv_std_ref, logp_c_ref,
                  w1_ref, b1_ref, w2_ref, b2_ref, w3_ref, b3_ref,
                  mu_ref, logp_ref):
    mu = _mlp_mu(x_ref[...], w1_ref[...], b1_ref[...],
                 w2_ref[...], b2_ref[...], w3_ref[...], b3_ref[...])
    mu_ref[...] = mu.astype(mu_ref.dtype)

    # z' = (a - mu) * inv_std * sqrt(0.5)   (sqrt(0.5) folded in the wrapper),
    # kept in f32 for logp accuracy; only the mu matmuls run with bf16 operands.
    z = (a_ref[...] - mu) * inv_std_ref[...]             # (tile_b, act_dim) f32
    zz = z * z
    ones_row = jnp.ones((1, zz.shape[1]), jnp.float32)   # (1, act_dim)
    # (1, act_dim) . (tile_b, act_dim)^T -> (1, tile_b): lane-dense logp row
    # straight off the MXU (no sublane->lane relayout).
    ssq = jax.lax.dot_general(
        ones_row, zz,
        dimension_numbers=(((1,), (1,)), ((), ())),
        preferred_element_type=jnp.float32)
    # logp = logp_const - 0.5 * sum(z^2), fully in-kernel (no extra XLA pass).
    logp_ref[...] = (logp_c_ref[0, 0] - ssq).astype(logp_ref.dtype)


# ---------------------------------------------------------------------------
# Wrapper
# ---------------------------------------------------------------------------
def gaussian_actor_forward(obs, act, params, std_factor=1.0):
    """Returns ((mu, std), logp_a) mirroring GaussianActor.forward."""
    w1, b1, w2, b2, w3, b3, log_std = params  # biases / log_std are (1, N)
    obs = obs.astype(jnp.float32)
    B, obs_dim = obs.shape
    h1 = w1.shape[1]
    h2 = w2.shape[1]
    act_dim = w3.shape[1]

    tile_b = _choose_tile_b(B)
    num_tiles = pl.cdiv(B, tile_b)   # ragged tail handled by Pallas OOB masking

    # MXU operands in bf16 (single pass); biases stay f32.
    w1b = w1.astype(jnp.bfloat16)
    w2b = w2.astype(jnp.bfloat16)
    w3b = w3.astype(jnp.bfloat16)
    b1f = b1.astype(jnp.float32)
    b2f = b2.astype(jnp.float32)
    b3f = b3.astype(jnp.float32)
    weight_inputs = (w1b, b1f, w2b, b2f, w3b, b3f)

    def row_spec(n):
        return pl.BlockSpec((tile_b, n), lambda i: (i, 0))

    def const_spec(shape):
        return pl.BlockSpec(shape, lambda i: (0, 0))

    weight_specs = [
        const_spec((obs_dim, h1)), const_spec((1, h1)),
        const_spec((h1, h2)), const_spec((1, h2)),
        const_spec((h2, act_dim)), const_spec((1, act_dim)),
    ]
    cparams = pltpu.CompilerParams(
        dimension_semantics=("parallel",),   # batch tiles are independent
        vmem_limit_bytes=32 << 20,
    )

    # Distribution scale + hoisted log-prob constants (tiny f32 XLA glue).
    sf = jnp.float32(std_factor)
    log_std_f32 = log_std.astype(jnp.float32).reshape(1, -1)   # (1, act_dim)
    std_row = sf * jnp.exp(log_std_f32)                        # (1, act_dim)
    std = std_row.reshape(-1)                                  # (act_dim,)

    if act is None:
        mu = pl.pallas_call(
            _mu_kernel,
            out_shape=jax.ShapeDtypeStruct((B, act_dim), jnp.float32),
            grid=(num_tiles,),
            in_specs=[row_spec(obs_dim)] + weight_specs,
            out_specs=row_spec(act_dim),
            compiler_params=cparams,
        )(obs, *weight_inputs)
        return (mu, std), None

    act = act.astype(jnp.float32)

    # sqrt(0.5) folded into inv_std so the in-kernel sum of squares is already
    # 0.5 * sum(z^2); logp_const carries every transcendental term.
    inv_std_half = jnp.sqrt(jnp.float32(0.5)) / std_row        # (1, act_dim)
    logp_const = -(jnp.sum(log_std_f32)
                   + act_dim * (jnp.log(sf) + 0.5 * _LN_2PI))
    logp_const = logp_const.astype(jnp.float32).reshape(1, 1)  # SMEM scalar

    mu, logp_slab = pl.pallas_call(
        _fused_kernel,
        out_shape=(
            jax.ShapeDtypeStruct((B, act_dim), jnp.float32),
            jax.ShapeDtypeStruct((num_tiles, 1, tile_b), jnp.float32),
        ),
        grid=(num_tiles,),
        in_specs=[row_spec(obs_dim), row_spec(act_dim),
                  const_spec((1, act_dim)),
                  pl.BlockSpec(memory_space=pltpu.MemorySpace.SMEM)]
                 + weight_specs,
        out_specs=(
            row_spec(act_dim),
            # lane-dense logp slab: one (1, tile_b) row per grid step
            pl.BlockSpec((None, 1, tile_b), lambda i: (i, 0, 0)),
        ),
        compiler_params=cparams,
    )(obs, act, inv_std_half, logp_const, *weight_inputs)

    logp_a = logp_slab.reshape(-1)[:B]
    return (mu, std), logp_a


# ---------------------------------------------------------------------------
# Deterministic parameter init (torch.nn.Linear-style uniform +-1/sqrt(fan_in))
# Biases / log_std stored as (1, N) rows once, at setup time.
# ---------------------------------------------------------------------------
def init_params(key, obs_dim, hidden_sizes, act_dim):
    sizes = [obs_dim] + list(hidden_sizes) + [act_dim]
    params = []
    for i in range(len(sizes) - 1):
        fan_in, fan_out = sizes[i], sizes[i + 1]
        key, kw, kb = jax.random.split(key, 3)
        bound = 1.0 / math.sqrt(fan_in)
        w = jax.random.uniform(kw, (fan_in, fan_out), jnp.float32, -bound, bound)
        b = jax.random.uniform(kb, (1, fan_out), jnp.float32, -bound, bound)
        params += [w, b]
    log_std = -1.0 * jnp.ones((1, act_dim), dtype=jnp.float32)  # as in __init__
    params.append(log_std)
    return tuple(params)


# ---------------------------------------------------------------------------
# Pure-JAX reference for correctness sanity check
# ---------------------------------------------------------------------------
def _ref_forward(obs, act, params, std_factor=1.0):
    w1, b1, w2, b2, w3, b3, log_std = params
    h = jnp.tanh(obs @ w1 + b1)
    h = jnp.tanh(h @ w2 + b2)
    mu = h @ w3 + b3
    std = std_factor * jnp.exp(log_std)                  # (1, act_dim)
    z = (act - mu) / std
    logp = jnp.sum(-0.5 * z * z - jnp.log(std) - 0.5 * _LN_2PI, axis=-1)
    return mu, std.reshape(-1), logp


if __name__ == "__main__":
    obs_dim, act_dim = 32, 8
    hidden_sizes = (64, 64)

    key = jax.random.PRNGKey(0)
    key, k_obs, k_act, k_obs2, k_act2 = jax.random.split(key, 5)
    params = init_params(key, obs_dim, hidden_sizes, act_dim)

    # --- small "action sampling"-sized batch ---------------------------------
    B = 8
    obs = jax.random.normal(k_obs, (B, obs_dim), dtype=jnp.float32)
    act = jax.random.normal(k_act, (B, act_dim), dtype=jnp.float32)

    # fused path (mu + logp)
    (mu, std), logp_a = gaussian_actor_forward(obs, act, params, std_factor=1.0)
    mu, std, logp_a = jax.block_until_ready((mu, std, logp_a))

    # act=None path (mu only)
    (mu2, std2), logp_none = gaussian_actor_forward(obs, None, params)
    mu2 = jax.block_until_ready(mu2)
    assert logp_none is None

    mu_ref, std_ref, logp_ref = _ref_forward(obs, act, params, std_factor=1.0)
    assert mu.shape == (B, act_dim) and logp_a.shape == (B,)
    # Matmul operands run in bf16 on the MXU (f32 accumulation), so tolerances
    # are relaxed vs. a pure-f32 reference.
    assert jnp.allclose(mu, mu_ref, rtol=2e-2, atol=5e-2)
    assert jnp.allclose(mu2, mu_ref, rtol=2e-2, atol=5e-2)
    assert jnp.allclose(std, std_ref, rtol=1e-5, atol=1e-6)
    assert jnp.allclose(logp_a, logp_ref, rtol=2e-2, atol=2e-1)

    # --- ragged-tail batch (B not a multiple of the tile): exercises the
    #     no-pad path where the last block reads OOB rows and masks OOB writes.
    B2 = 50
    obs2 = jax.random.normal(k_obs2, (B2, obs_dim), dtype=jnp.float32)
    act2 = jax.random.normal(k_act2, (B2, act_dim), dtype=jnp.float32)
    (mu3, std3), logp3 = gaussian_actor_forward(obs2, act2, params, std_factor=0.5)
    mu3, std3, logp3 = jax.block_until_ready((mu3, std3, logp3))
    mu3_ref, std3_ref, logp3_ref = _ref_forward(obs2, act2, params, std_factor=0.5)
    assert mu3.shape == (B2, act_dim) and logp3.shape == (B2,)
    assert bool(jnp.all(jnp.isfinite(mu3))) and bool(jnp.all(jnp.isfinite(logp3)))
    assert jnp.allclose(mu3, mu3_ref, rtol=2e-2, atol=5e-2)
    assert jnp.allclose(std3, std3_ref, rtol=1e-5, atol=1e-6)
    assert jnp.allclose(logp3, logp3_ref, rtol=2e-2, atol=2e-1)

    print("KERNEL_OK")
</pallas_src>

<mosaic_0001>
module attributes {stable_mosaic.version = 11 : i64} {
  func.func @_fused_kernel(%arg0: i32, %arg1: memref<8x32xf32, #tpu.memory_space<vmem>>, %arg2: memref<8x8xf32, #tpu.memory_space<vmem>>, %arg3: memref<1x8xf32, #tpu.memory_space<vmem>>, %arg4: memref<1x1xf32, #tpu.memory_space<smem>>, %arg5: memref<32x64xbf16, #tpu.memory_space<vmem>>, %arg6: memref<1x64xf32, #tpu.memory_space<vmem>>, %arg7: memref<64x64xbf16, #tpu.memory_space<vmem>>, %arg8: memref<1x64xf32, #tpu.memory_space<vmem>>, %arg9: memref<64x8xbf16, #tpu.memory_space<vmem>>, %arg10: memref<1x8xf32, #tpu.memory_space<vmem>>, %arg11: memref<8x8xf32, #tpu.memory_space<vmem>>, %arg12: memref<1x1x8xf32, #tpu.memory_space<vmem>>) attributes {dimension_semantics = [#tpu.dimension_semantics<parallel>], iteration_bounds = array<i64: 1>, scalar_prefetch = 0 : i64, scratch_operands = 0 : i64, tpu.core_type = #tpu.core_type<tc>, window_params = [{transform_indices = @transform_0, window_bounds = array<i64: 8, 32>}, {transform_indices = @transform_1, window_bounds = array<i64: 8, 8>}, {pipeline_mode = #tpu.pipeline_mode<synchronous>, transform_indices = @transform_2, window_bounds = array<i64: 1, 8>}, {transform_indices = @transform_3, window_bounds = array<i64: 1, 1>}, {pipeline_mode = #tpu.pipeline_mode<synchronous>, transform_indices = @transform_4, window_bounds = array<i64: 32, 64>}, {pipeline_mode = #tpu.pipeline_mode<synchronous>, transform_indices = @transform_5, window_bounds = array<i64: 1, 64>}, {pipeline_mode = #tpu.pipeline_mode<synchronous>, transform_indices = @transform_6, window_bounds = array<i64: 64, 64>}, {pipeline_mode = #tpu.pipeline_mode<synchronous>, transform_indices = @transform_7, window_bounds = array<i64: 1, 64>}, {pipeline_mode = #tpu.pipeline_mode<synchronous>, transform_indices = @transform_8, window_bounds = array<i64: 64, 8>}, {pipeline_mode = #tpu.pipeline_mode<synchronous>, transform_indices = @transform_9, window_bounds = array<i64: 1, 8>}, {transform_indices = @transform_10, window_bounds = array<i64: 8, 8>}, {transform_indices = @transform_11, window_bounds = array<i64: 1, 1, 8>}]} {
    %c0 = arith.constant 0 : index
    %c0_0 = arith.constant 0 : index
    %0 = vector.load %arg1[%c0, %c0_0] : memref<8x32xf32, #tpu.memory_space<vmem>>, vector<8x32xf32>
    %c0_1 = arith.constant 0 : index
    %c0_2 = arith.constant 0 : index
    %1 = vector.load %arg5[%c0_1, %c0_2] : memref<32x64xbf16, #tpu.memory_space<vmem>>, vector<32x64xbf16>
    %c0_3 = arith.constant 0 : index
    %c0_4 = arith.constant 0 : index
    %2 = vector.load %arg6[%c0_3, %c0_4] : memref<1x64xf32, #tpu.memory_space<vmem>>, vector<1x64xf32>
    %c0_5 = arith.constant 0 : index
    %c0_6 = arith.constant 0 : index
    %3 = vector.load %arg7[%c0_5, %c0_6] : memref<64x64xbf16, #tpu.memory_space<vmem>>, vector<64x64xbf16>
    %c0_7 = arith.constant 0 : index
    %c0_8 = arith.constant 0 : index
    %4 = vector.load %arg8[%c0_7, %c0_8] : memref<1x64xf32, #tpu.memory_space<vmem>>, vector<1x64xf32>
    %c0_9 = arith.constant 0 : index
    %c0_10 = arith.constant 0 : index
    %5 = vector.load %arg9[%c0_9, %c0_10] : memref<64x8xbf16, #tpu.memory_space<vmem>>, vector<64x8xbf16>
    %c0_11 = arith.constant 0 : index
    %c0_12 = arith.constant 0 : index
    %6 = vector.load %arg10[%c0_11, %c0_12] : memref<1x8xf32, #tpu.memory_space<vmem>>, vector<1x8xf32>
    %7 = arith.truncf %0 : vector<8x32xf32> to vector<8x32xbf16>
    %cst = arith.constant dense<0.000000e+00> : vector<8x64xf32>
    %8 = tpu.matmul %7, %1, %cst {dimension_numbers = #tpu.dot_dimension_numbers<[1], [0], [0], [1], [0, 0, 1, 1], [], []>} : vector<8x32xbf16>, vector<32x64xbf16>, vector<8x64xf32> -> vector<8x64xf32>
    %9 = vector.broadcast %2 : vector<1x64xf32> to vector<8x64xf32>
    %10 = arith.addf %8, %9 : vector<8x64xf32>
    %11 = math.tanh %10 : vector<8x64xf32>
    %12 = arith.truncf %11 : vector<8x64xf32> to vector<8x64xbf16>
    %cst_13 = arith.constant dense<0.000000e+00> : vector<8x64xf32>
    %13 = tpu.matmul %12, %3, %cst_13 {dimension_numbers = #tpu.dot_dimension_numbers<[1], [0], [0], [1], [0, 0, 1, 1], [], []>} : vector<8x64xbf16>, vector<64x64xbf16>, vector<8x64xf32> -> vector<8x64xf32>
    %14 = vector.broadcast %4 : vector<1x64xf32> to vector<8x64xf32>
    %15 = arith.addf %13, %14 : vector<8x64xf32>
    %16 = math.tanh %15 : vector<8x64xf32>
    %17 = arith.truncf %16 : vector<8x64xf32> to vector<8x64xbf16>
    %cst_14 = arith.constant dense<0.000000e+00> : vector<8x8xf32>
    %18 = tpu.matmul %17, %5, %cst_14 {dimension_numbers = #tpu.dot_dimension_numbers<[1], [0], [0], [1], [0, 0, 1, 1], [], []>} : vector<8x64xbf16>, vector<64x8xbf16>, vector<8x8xf32> -> vector<8x8xf32>
    %19 = vector.broadcast %6 : vector<1x8xf32> to vector<8x8xf32>
    %20 = arith.addf %18, %19 : vector<8x8xf32>
    %c0_15 = arith.constant 0 : index
    %c0_16 = arith.constant 0 : index
    %21 = vector.load %arg11[%c0_15, %c0_16] : memref<8x8xf32, #tpu.memory_space<vmem>>, vector<8x8xf32>
    tpu.vector_store %arg11[%c0_15, %c0_16], %20 {strides = array<i32>} : memref<8x8xf32, #tpu.memory_space<vmem>>, vector<8x8xf32>,
    %c0_17 = arith.constant 0 : index
    %c0_18 = arith.constant 0 : index
    %22 = vector.load %arg2[%c0_17, %c0_18] : memref<8x8xf32, #tpu.memory_space<vmem>>, vector<8x8xf32>
    %23 = arith.subf %22, %20 : vector<8x8xf32>
    %c0_19 = arith.constant 0 : index
    %c0_20 = arith.constant 0 : index
    %24 = vector.load %arg3[%c0_19, %c0_20] : memref<1x8xf32, #tpu.memory_space<vmem>>, vector<1x8xf32>
    %25 = vector.broadcast %24 : vector<1x8xf32> to vector<8x8xf32>
    %26 = arith.mulf %23, %25 : vector<8x8xf32>
    %27 = arith.mulf %26, %26 : vector<8x8xf32>
    %cst_21 = arith.constant 1.000000e+00 : f32
    %28 = vector.broadcast %cst_21 : f32 to vector<1x8xf32>
    %cst_22 = arith.constant dense<0.000000e+00> : vector<1x8xf32>
    %29 = tpu.matmul %28, %27, %cst_22 {dimension_numbers = #tpu.dot_dimension_numbers<[1], [1], [0], [0], [0, 0, 1, 0], [], []>} : vector<1x8xf32>, vector<8x8xf32>, vector<1x8xf32> -> vector<1x8xf32>
    %c0_23 = arith.constant 0 : index
    %c0_24 = arith.constant 0 : index
    %30 = memref.load %arg4[%c0_23, %c0_24] : memref<1x1xf32, #tpu.memory_space<smem>>
    %31 = vector.broadcast %30 : f32 to vector<1x8xf32>
    %32 = arith.subf %31, %29 : vector<1x8xf32>
    %c0_25 = arith.constant 0 : index
    %c0_26 = arith.constant 0 : index
    %c0_27 = arith.constant 0 : index
    %33 = vector.load %arg12[%c0_25, %c0_26, %c0_27] : memref<1x1x8xf32, #tpu.memory_space<vmem>>, vector<1x1x8xf32>
    %34 = vector.shape_cast %33 : vector<1x1x8xf32> to vector<1x8xf32>
    %35 = vector.shape_cast %32 : vector<1x8xf32> to vector<1x1x8xf32>
    tpu.vector_store %arg12[%c0_25, %c0_26, %c0_27], %35 {strides = array<i32>} : memref<1x1x8xf32, #tpu.memory_space<vmem>>, vector<1x1x8xf32>,
    return
  }
  func.func @transform_0(%arg0: i32) -> (i32, i32) {
    %c0_i32 = arith.constant 0 : i32
    %c0_i32_0 = arith.constant 0 : i32
    return %arg0, %c0_i32 : i32, i32
  }
  func.func @transform_1(%arg0: i32) -> (i32, i32) {
    %c0_i32 = arith.constant 0 : i32
    %c0_i32_0 = arith.constant 0 : i32
    return %arg0, %c0_i32 : i32, i32
  }
  func.func @transform_2(%arg0: i32) -> (i32, i32) {
    %c0_i32 = arith.constant 0 : i32
    %c0_i32_0 = arith.constant 0 : i32
    %c0_i32_1 = arith.constant 0 : i32
    return %c0_i32, %c0_i32_0 : i32, i32
  }
  func.func @transform_3(%arg0: i32) -> (i32, i32) {
    %c0_i32 = arith.constant 0 : i32
    %c0_i32_0 = arith.constant 0 : i32
    %c0_i32_1 = arith.constant 0 : i32
    return %c0_i32, %c0_i32_0 : i32, i32
  }
  func.func @transform_4(%arg0: i32) -> (i32, i32) {
    %c0_i32 = arith.constant 0 : i32
    %c0_i32_0 = arith.constant 0 : i32
    %c0_i32_1 = arith.constant 0 : i32
    return %c0_i32, %c0_i32_0 : i32, i32
  }
  func.func @transform_5(%arg0: i32) -> (i32, i32) {
    %c0_i32 = arith.constant 0 : i32
    %c0_i32_0 = arith.constant 0 : i32
    %c0_i32_1 = arith.constant 0 : i32
    return %c0_i32, %c0_i32_0 : i32, i32
  }
  func.func @transform_6(%arg0: i32) -> (i32, i32) {
    %c0_i32 = arith.constant 0 : i32
    %c0_i32_0 = arith.constant 0 : i32
    %c0_i32_1 = arith.constant 0 : i32
    return %c0_i32, %c0_i32_0 : i32, i32
  }
  func.func @transform_7(%arg0: i32) -> (i32, i32) {
    %c0_i32 = arith.constant 0 : i32
    %c0_i32_0 = arith.constant 0 : i32
    %c0_i32_1 = arith.constant 0 : i32
    return %c0_i32, %c0_i32_0 : i32, i32
  }
  func.func @transform_8(%arg0: i32) -> (i32, i32) {
    %c0_i32 = arith.constant 0 : i32
    %c0_i32_0 = arith.constant 0 : i32
    %c0_i32_1 = arith.constant 0 : i32
    return %c0_i32, %c0_i32_0 : i32, i32
  }
  func.func @transform_9(%arg0: i32) -> (i32, i32) {
    %c0_i32 = arith.constant 0 : i32
    %c0_i32_0 = arith.constant 0 : i32
    %c0_i32_1 = arith.constant 0 : i32
    return %c0_i32, %c0_i32_0 : i32, i32
  }
  func.func @transform_10(%arg0: i32) -> (i32, i32) {
    %c0_i32 = arith.constant 0 : i32
    %c0_i32_0 = arith.constant 0 : i32
    return %arg0, %c0_i32 : i32, i32
  }
  func.func @transform_11(%arg0: i32) -> (i32, i32, i32) {
    %c0_i32 = arith.constant 0 : i32
    %c0_i32_0 = arith.constant 0 : i32
    %c0_i32_1 = arith.constant 0 : i32
    return %arg0, %c0_i32, %c0_i32_0 : i32, i32, i32
  }
}

</mosaic_0001>

<bundles_post_ra>
// kernel: tpu_custom_call.1
= control target key start
LH: loop header
LB: loop body
LE: loop exit
PB: predicated region body
PF: predicated region fallthrough
CT: control target
= control target key end

     0   :  { %18 = vsyncpa [#allocation4], 0  ;;  %s630_s0 = inlined_call_operand.hbm [shape: f32[8,32], index: 0, kind: input, shape index: {}]   ;;  %s631_s1 = inlined_call_operand.hbm [shape: f32[8,8], index: 1, kind: input, shape index: {}]   ;;  %s632_s2 = inlined_call_operand.vmem [shape: f32[1,8], index: 2, kind: input, shape index: {}]   ;;  %s633_s3 = inlined_call_operand.<no memory space> [shape: f32[1,1], index: 3, kind: input, shape index: {}]   ;;  %s634_s4 = inlined_call_operand.hbm [shape: bf16[32,64], index: 4, kind: input, shape index: {}]   ;;  %s635_s5 = inlined_call_operand.vmem [shape: f32[1,64], index: 5, kind: input, shape index: {}]   ;;  %s636_s6 = inlined_call_operand.vmem [shape: bf16[64,64], index: 6, kind: input, shape index: {}]   ;;  %s637_s7 = inlined_call_operand.vmem [shape: f32[1,64], index: 7, kind: input, shape index: {}]   ;;  %s638_s8 = inlined_call_operand.vmem [shape: bf16[64,8], index: 8, kind: input, shape index: {}]   ;;  %s639_s9 = inlined_call_operand.vmem [shape: f32[1,8], index: 9, kind: input, shape index: {}]   ;;  %s640_s10 = inlined_call_operand.hbm [shape: f32[8,8], index: 10, kind: output, shape index: {0}]   ;;  %s641_s11 = inlined_call_operand.hbm [shape: f32[1,1,8], index: 11, kind: output, shape index: {1}]  }
   0x1   :  { %19 = vsyncpa [#allocation7], 0 }
   0x2   :  { %20 = vsyncpa [#allocation5], 0  ;;  %s38_s19 = sshll.u32 %s631_s1, 4  ;;  %s39_s19 = int_to_ptr.hbm [resolvable:$true] %s38_s19 }
   0x3   :  { %21 = vsyncpa [#allocation11], 0  ;;  %s506_s20 = smov [#allocation6]   ;;  %s27_s24 = sshll.u32 %s630_s0, 4  ;;  %s28_s24 = int_to_ptr.hbm [resolvable:$true] %s27_s24 }
   0x4   :  { %s40_s21 = sshll.u32 %s506_s20, 4  ;;  %s507_s25 = smov [#allocation3]   ;;  %s41_s21 = int_to_ptr.vmem [resolvable:$true] %s40_s21 }
   0x5   :  { %43 = dma.hbm_to_vmem [thread:$0]  %s39_s19, 128, %s41_s21, [#allocation7]  }
   0x6   :  { %s29_s26 = sshll.u32 %s507_s25, 4  ;;  %s52_s29 = sshll.u32 %s634_s4, 4  ;;  %s30_s26 = int_to_ptr.vmem [resolvable:$true] %s29_s26  ;;  %s53_s29 = int_to_ptr.hbm [resolvable:$true] %s52_s29 }
   0x7   :  { %32 = dma.hbm_to_vmem [thread:$0]  %s28_s24, 128, %s30_s26, [#allocation4]  }
   0x8   :  { %s508_s1 = smov [#allocation8]   ;;  %s509_s12 = smov 64  }
   0x9   :  { %s54_s30 = sshll.u32 %s508_s1, 4  ;;  %s510_s13 = smov 4   ;;  %s55_s30 = int_to_ptr.vmem [resolvable:$true] %s54_s30 }
   0xa   :  { %60 = dma.hbm_to_vmem [thread:$0]  %s53_s29, 256, %s55_s30, [#allocation7], %s509_s12, %s509_s12, %s510_s13  }
   0xb   :  { %498 = dma.done.wait [#allocation4], 128  }
   0xc   :  { %499 = vsyncadd [#allocation4], 4294967168 }
   0xd   :  { %500 = dma.done.wait [#allocation7], 384  }
   0xe   :  { %501 = vsyncadd [#allocation7], 4294966912  ;;  %v353_v0 = vld [vmem:[#allocation8 + $0x8] sm:$0xff]  ;;  %v352_v1 = vld [vmem:[#allocation8] sm:$0xff]  ;;  %vm124_vm0 = vcmask 261120   ;;  %vm170_vm1 = vcmask 523264   ;;  %v269_v34 = vstv %s633_s3 }
   0xf   :  { %v84_v2 = vld [vmem:[#allocation3] sm:$0xff]  ;;  %v357_v3 = vld [vmem:[%s636_s6 + $0x18] sm:$0xff]  ;;  %134 = vmatpush.bf16.msra.mxu0 %v353_v0  ;;  %v356_v5 = vld [vmem:[%s636_s6 + $0x10] sm:$0xff]  ;;  %vm232_vm2 = vcmask 64512   ;;  %v511_v33 = vmov 1.0   ;;  %s512_s0 = smov [#allocation9]  }
  0x10   :  { %178 = vmatpush.bf16.msra.mxu1 %v357_v3  ;;  %v108_v4 = vpack.c.bf16 %v84_v2, %v84_v2  ;;  %v355_v6 = vld [vmem:[%s636_s6 + $0x8] sm:$0xff]  ;;  %v354_v7 = vld [vmem:[%s636_s6] sm:$0xff]  ;;  %v361_v8 = vld [vmem:[%s638_s8 + $0x18] sm:$0xff]  ;;  %s278_s14 = sshll.u32 %s512_s0, 4  ;;  %s291_s19 = sshll.u32 %s641_s11, 4  ;;  %vm271_vm3 = vcmask 57344   ;;  %s279_s14 = int_to_ptr.vmem [resolvable:$true] %s278_s14  ;;  %s292_s19 = int_to_ptr.hbm [resolvable:$true] %s291_s19 }
  0x11   :  { %223 = vmatpush.bf16.msra.mxu2 %v361_v8  ;;  %v370_v9 = vld [vmem:[%s635_s5] ss:$0 sm:$0xff]  ;;  %v360_v15 = vld [vmem:[%s638_s8 + $0x10] sm:$0xff]  ;;  %v359_v16 = vld [vmem:[%s638_s8 + $0x8] sm:$0xff] }
  0x12   :  { %v358_v17 = vld [vmem:[%s638_s8] sm:$0xff]  ;;  %v234_v26 = vld [vmem:[#allocation6] sm:$0xff] }
  0x13   :  { %135 = vmatpush.bf16.msra.mxu0 %v352_v1  ;;  %v371_v18 = vld [vmem:[%s637_s7] ss:$0 sm:$0xff] }
  0x14   :  { %179 = vmatpush.bf16.msra.mxu1 %v356_v5  ;;  %v372_v24 = vld [vmem:[%s639_s9] ss:$0 sm:$0xff]  ;;  %s280_s9 = sshll.u32 %s640_s10, 4  ;;  %s281_s9 = int_to_ptr.hbm [resolvable:$true] %s280_s9 }
  0x15   :  { %224 = vmatpush.bf16.msra.mxu2 %v360_v15  ;;  %v373_v28 = vld [vmem:[%s632_s2] ss:$0 sm:$0xff]  ;;  %s513_s2 = smov [#allocation10]  }
  0x16   :  { %315 = vmatmul.msk.bf16.vlgmr.msra.gmra.mxu0 %vm124_vm0, %v108_v4  ;;  %s289_s16 = sshll.u32 %s513_s2, 4  ;;  %s290_s16 = int_to_ptr.vmem [resolvable:$true] %s289_s16 }
  0x18   :  { %180 = vmatpush.bf16.msra.mxu1 %v355_v6 }
  0x19   :  { %225 = vmatpush.bf16.msra.mxu2 %v359_v16 }
  0x1c   :  { %181 = vmatpush.bf16.msra.mxu1 %v354_v7 }
  0x1d   :  { %226 = vmatpush.bf16.msra.mxu2 %v358_v17 }
  0x93   :  { %v137_v10 = vpop.f32.mrf.mxu0 }
  0x94   :  { %v138_v11 = vadd.f32 %v370_v9, %v137_v10 }
  0x96   :  { %374 = vtanh.f32 %v138_v11 }
  0x9b   :  { %v139_v12 = vpop.f32.mrf.mxu0 }
  0x9c   :  { %v375_v13 = vpop.eup %374 }
  0x9d   :  { %v142_v14 = vpack.c.bf16 %v375_v13, %v375_v13 }
  0x9f   :  { %332 = vmatmul.msk.bf16.vlgmr.msra.gmra.mxu1 %vm170_vm1, %v142_v14 }
 0x11c   :  { %v183_v19 = vpop.f32.mrf.mxu1 }
 0x11d   :  { %v184_v20 = vadd.f32 %v371_v18, %v183_v19 }
 0x11f   :  { %376 = vtanh.f32 %v184_v20 }
 0x124   :  { %v185_v21 = vpop.f32.mrf.mxu1 }
 0x125   :  { %v377_v22 = vpop.eup %376 }
 0x126   :  { %v188_v23 = vpack.c.bf16 %v377_v22, %v377_v22 }
 0x128   :  { %349 = vmatmul.msk.bf16.vlgmr.msra.gmra.mxu2 %vm170_vm1, %v188_v23 }
 0x1ab   :  { %v228_v25 = vpop.f32.mrf.mxu2 }
 0x1ac   :  { %v229_v27 = vadd.f32 %v372_v24, %v228_v25 }
 0x1ae   :  { %v235_v29 = vsub.f32 %v234_v26, %v229_v27  ;;  %233 = vst.msk [vmem:[#allocation9] sm:$0xff] %vm232_vm2, %v229_v27 }
 0x1af   :  { %283 = dma.vmem_to_hbm [thread:$0]  %s279_s14, 128, %s281_s9, [#allocation5]  }
 0x1b0   :  { %v240_v30 = vmul.f32 %v373_v28, %v235_v29 }
 0x1b2   :  { %v241_v31 = vmul.f32 %v240_v30, %v240_v30 }
 0x1b3   :  { %v230_v32 = vpop.f32.mrf.mxu2 }
 0x1b4   :  { %350 = vmatpush.xpose.msk.msra.mxu3 %vm232_vm2, %v241_v31 }
 0x1b7   :  { %351 = vmatmul.msk.f32.vlgmr.msra.gmra.mxu3 %vm232_vm2, %v511_v33 }
 0x23a   :  { %v265_v35 = vpop.f32.mrf.mxu3 }
 0x23b   :  { %v270_v36 = vsub.f32 %v269_v34, %v265_v35 }
 0x23d   :  { %272 = vst.msk [vmem:[#allocation10] sm:$0x1] %vm271_vm3, %v270_v36 }
 0x23e   :  { %294 = dma.vmem_to_hbm [thread:$0]  %s290_s16, 16, %s292_s19, [#allocation11]  }
 0x23f   :  { %502 = dma.done.wait [#allocation5], 128  }
 0x240   :  { %503 = vsyncadd [#allocation5], 4294967168 }
 0x241   :  { %504 = dma.done.wait [#allocation11], 16  }
 0x242   :  { %505 = vsyncadd [#allocation11], 4294967280 }
 0x243   :  { %303 = vsyncpa [#allocation4], 1 }
 0x244   :  { %304 = vsyncpa [#allocation7], 1 }
 0x245   :  { %305 = vsyncpa [#allocation5], 1 }
 0x246   :  { %306 = vsyncpa [#allocation11], 1 }

</bundles_post_ra>
